<compile_context>
chip_gen: v7x
topology: tpu7x:2x2x1
jax: 0.10.0
libtpu: 0.0.40
codegen_flags: <defaults>
</compile_context>

<pallas_src>
import jax
import jax.numpy as jnp
import numpy as np
from jax.experimental import pallas as pl
from jax.experimental.pallas import tpu as pltpu


def _attention_kernel(latent_ref, path_ref, w_lat_ref, w_path_ref, bias_ref, out_ref):
    """One batch tile, fully VMEM-resident.

    latent_ref/path_ref/out_ref : (TB, D)
    w_lat_ref/w_path_ref        : (D, H)   pre-transposed W halves
    bias_ref                    : (1, H)   fused (linear bias + extra bias)
    """
    latent = latent_ref[...]                                     # (TB, D)

    # cat([latent, path], -1) @ W.T  ==  latent @ W_lat + path @ W_path
    h = (jnp.dot(latent, w_lat_ref[...], preferred_element_type=jnp.float32)
         + jnp.dot(path_ref[...], w_path_ref[...], preferred_element_type=jnp.float32)
         + bias_ref[...])                                        # (TB, H)
    h = jnp.maximum(h, 0.0)                                      # relu

    # softmax over the feature (last) axis, row-wise -> safe under batch tiling.
    m = jnp.max(h, axis=-1, keepdims=True)
    e = jnp.exp(h - m)
    denom = jnp.sum(e, axis=-1, keepdims=True)
    att = e * pl.reciprocal(denom, approx=False)                 # (TB, H)

    out_ref[...] = latent * att                                  # (TB, D), needs H == D


def attention_layer(latent, path_output, W, b, bias, *, block_b=None):
    """Wrapper: parameter re-layout (glue) + single pallas_call (hot path)."""
    B, D = latent.shape
    H = W.shape[0]
    assert W.shape == (H, 2 * D)
    assert H == D, "latent * attention requires out_dim == in_dim"

    # Split the Linear weight by concat segment and pre-transpose to (in, out).
    w_lat = jnp.asarray(W[:, :D].T, jnp.float32)                 # (D, H)
    w_path = jnp.asarray(W[:, D:].T, jnp.float32)                # (D, H)
    # Fuse Linear bias and the module's extra bias parameter into one row.
    fused_bias = jnp.asarray((b + bias).reshape(1, H), jnp.float32)

    # Batch tile: sublane-aligned (multiple of 8) when possible; falls back to the
    # full batch (single grid step) otherwise. Tiles stay tiny vs. VMEM limits
    # (even 512 x 32 f32 is 64 KiB), so no vmem_limit_bytes override is needed.
    if block_b is None:
        block_b = min(B, 512) if B % 8 == 0 else B
    grid = (pl.cdiv(B, block_b),)

    latent = jnp.asarray(latent, jnp.float32)
    path_output = jnp.asarray(path_output, jnp.float32)

    return pl.pallas_call(
        _attention_kernel,
        out_shape=jax.ShapeDtypeStruct((B, D), jnp.float32),
        grid_spec=pltpu.PrefetchScalarGridSpec(
            num_scalar_prefetch=0,
            grid=grid,
            in_specs=[
                pl.BlockSpec((block_b, D), lambda i: (i, 0)),    # latent tile
                pl.BlockSpec((block_b, D), lambda i: (i, 0)),    # path tile
                pl.BlockSpec((D, H), lambda i: (0, 0)),          # W_lat (resident)
                pl.BlockSpec((D, H), lambda i: (0, 0)),          # W_path (resident)
                pl.BlockSpec((1, H), lambda i: (0, 0)),          # fused bias
            ],
            out_specs=pl.BlockSpec((block_b, D), lambda i: (i, 0)),
        ),
        compiler_params=pltpu.CompilerParams(
            dimension_semantics=("parallel",),                   # megacore on v7x
        ),
    )(latent, path_output, w_lat, w_path, fused_bias)


def attention_layer_ref(latent, path_output, W, b, bias):
    """Pure-JAX reference mirroring the PyTorch forward line by line."""
    inputs = jnp.concatenate([latent, path_output], axis=-1)
    output = jnp.maximum(inputs @ W.T + b + bias, 0.0)
    attention = jax.nn.softmax(output, axis=-1)
    return latent * attention


def _run_case(key, B, D):
    H = D
    k_l, k_p, k_w, k_b, k_bias = jax.random.split(key, 5)
    latent = jax.random.normal(k_l, (B, D), jnp.float32)
    path_output = jax.random.normal(k_p, (B, D), jnp.float32)

    # nn.Linear-style init: uniform +-1/sqrt(fan_in), fan_in = 2*D.
    bound = 1.0 / np.sqrt(2 * D)
    W = jax.random.uniform(k_w, (H, 2 * D), jnp.float32, -bound, bound)
    b = jax.random.uniform(k_b, (H,), jnp.float32, -bound, bound)
    # Module initializes `bias` to zeros; use small random values to exercise the path.
    bias = 0.1 * jax.random.normal(k_bias, (H,), jnp.float32)

    out = attention_layer(latent, path_output, W, b, bias)
    out = jax.block_until_ready(out)
    ref = attention_layer_ref(latent, path_output, W, b, bias)
    np.testing.assert_allclose(np.asarray(out), np.asarray(ref), rtol=1e-5, atol=1e-5)


if __name__ == "__main__":
    # Shapes consistent with the module: in_dim = out_dim = 32 (latent size), batch 8.
    key = jax.random.PRNGKey(0)
    k0, k1 = jax.random.split(key, 2)

    _run_case(k0, B=8, D=32)    # sublane-aligned batch
    _run_case(k1, B=5, D=32)    # non-multiple-of-8 batch (full-extent block fallback)

    print("KERNEL_OK")
</pallas_src>

<mosaic_0001>
module attributes {stable_mosaic.version = 11 : i64} {
  func.func @_attention_kernel(%arg0: i32, %arg1: memref<8x32xf32, #tpu.memory_space<vmem>>, %arg2: memref<8x32xf32, #tpu.memory_space<vmem>>, %arg3: memref<32x32xf32, #tpu.memory_space<vmem>>, %arg4: memref<32x32xf32, #tpu.memory_space<vmem>>, %arg5: memref<1x32xf32, #tpu.memory_space<vmem>>, %arg6: memref<8x32xf32, #tpu.memory_space<vmem>>) attributes {dimension_semantics = [#tpu.dimension_semantics<parallel>], iteration_bounds = array<i64: 1>, scalar_prefetch = 0 : i64, scratch_operands = 0 : i64, tpu.core_type = #tpu.core_type<tc>, window_params = [{transform_indices = @transform_0, window_bounds = array<i64: 8, 32>}, {transform_indices = @transform_1, window_bounds = array<i64: 8, 32>}, {pipeline_mode = #tpu.pipeline_mode<synchronous>, transform_indices = @transform_2, window_bounds = array<i64: 32, 32>}, {pipeline_mode = #tpu.pipeline_mode<synchronous>, transform_indices = @transform_3, window_bounds = array<i64: 32, 32>}, {pipeline_mode = #tpu.pipeline_mode<synchronous>, transform_indices = @transform_4, window_bounds = array<i64: 1, 32>}, {transform_indices = @transform_5, window_bounds = array<i64: 8, 32>}]} {
    %c0 = arith.constant 0 : index
    %c0_0 = arith.constant 0 : index
    %0 = vector.load %arg1[%c0, %c0_0] : memref<8x32xf32, #tpu.memory_space<vmem>>, vector<8x32xf32>
    %c0_1 = arith.constant 0 : index
    %c0_2 = arith.constant 0 : index
    %1 = vector.load %arg3[%c0_1, %c0_2] : memref<32x32xf32, #tpu.memory_space<vmem>>, vector<32x32xf32>
    %cst = arith.constant dense<0.000000e+00> : vector<8x32xf32>
    %2 = tpu.matmul %0, %1, %cst {dimension_numbers = #tpu.dot_dimension_numbers<[1], [0], [0], [1], [0, 0, 1, 1], [], []>} : vector<8x32xf32>, vector<32x32xf32>, vector<8x32xf32> -> vector<8x32xf32>
    %c0_3 = arith.constant 0 : index
    %c0_4 = arith.constant 0 : index
    %3 = vector.load %arg2[%c0_3, %c0_4] : memref<8x32xf32, #tpu.memory_space<vmem>>, vector<8x32xf32>
    %c0_5 = arith.constant 0 : index
    %c0_6 = arith.constant 0 : index
    %4 = vector.load %arg4[%c0_5, %c0_6] : memref<32x32xf32, #tpu.memory_space<vmem>>, vector<32x32xf32>
    %cst_7 = arith.constant dense<0.000000e+00> : vector<8x32xf32>
    %5 = tpu.matmul %3, %4, %cst_7 {dimension_numbers = #tpu.dot_dimension_numbers<[1], [0], [0], [1], [0, 0, 1, 1], [], []>} : vector<8x32xf32>, vector<32x32xf32>, vector<8x32xf32> -> vector<8x32xf32>
    %6 = arith.addf %2, %5 : vector<8x32xf32>
    %c0_8 = arith.constant 0 : index
    %c0_9 = arith.constant 0 : index
    %7 = vector.load %arg5[%c0_8, %c0_9] : memref<1x32xf32, #tpu.memory_space<vmem>>, vector<1x32xf32>
    %8 = vector.broadcast %7 : vector<1x32xf32> to vector<8x32xf32>
    %9 = arith.addf %6, %8 : vector<8x32xf32>
    %cst_10 = arith.constant 0.000000e+00 : f32
    %10 = vector.broadcast %cst_10 : f32 to vector<8x32xf32>
    %11 = arith.maximumf %9, %10 : vector<8x32xf32>
    %cst_11 = arith.constant dense<0xFF800000> : vector<8xf32>
    %12 = vector.multi_reduction <maximumf>, %11, %cst_11 [1] : vector<8x32xf32> to vector<8xf32>
    %13 = vector.shape_cast %12 : vector<8xf32> to vector<8x1xf32>
    %14 = vector.broadcast %13 : vector<8x1xf32> to vector<8x32xf32>
    %15 = arith.subf %11, %14 : vector<8x32xf32>
    %16 = math.exp %15 : vector<8x32xf32>
    %cst_12 = arith.constant dense<0.000000e+00> : vector<8xf32>
    %17 = vector.multi_reduction <add>, %16, %cst_12 [1] : vector<8x32xf32> to vector<8xf32>
    %18 = vector.shape_cast %17 : vector<8xf32> to vector<8x1xf32>
    %19 = tpu.reciprocal %18 : vector<8x1xf32> -> vector<8x1xf32>
    %20 = vector.broadcast %19 : vector<8x1xf32> to vector<8x32xf32>
    %21 = arith.mulf %16, %20 : vector<8x32xf32>
    %22 = arith.mulf %0, %21 : vector<8x32xf32>
    %c0_13 = arith.constant 0 : index
    %c0_14 = arith.constant 0 : index
    %23 = vector.load %arg6[%c0_13, %c0_14] : memref<8x32xf32, #tpu.memory_space<vmem>>, vector<8x32xf32>
    tpu.vector_store %arg6[%c0_13, %c0_14], %22 {strides = array<i32>} : memref<8x32xf32, #tpu.memory_space<vmem>>, vector<8x32xf32>,
    return
  }
  func.func @transform_0(%arg0: i32) -> (i32, i32) {
    %c0_i32 = arith.constant 0 : i32
    %c0_i32_0 = arith.constant 0 : i32
    return %arg0, %c0_i32 : i32, i32
  }
  func.func @transform_1(%arg0: i32) -> (i32, i32) {
    %c0_i32 = arith.constant 0 : i32
    %c0_i32_0 = arith.constant 0 : i32
    return %arg0, %c0_i32 : i32, i32
  }
  func.func @transform_2(%arg0: i32) -> (i32, i32) {
    %c0_i32 = arith.constant 0 : i32
    %c0_i32_0 = arith.constant 0 : i32
    %c0_i32_1 = arith.constant 0 : i32
    return %c0_i32, %c0_i32_0 : i32, i32
  }
  func.func @transform_3(%arg0: i32) -> (i32, i32) {
    %c0_i32 = arith.constant 0 : i32
    %c0_i32_0 = arith.constant 0 : i32
    %c0_i32_1 = arith.constant 0 : i32
    return %c0_i32, %c0_i32_0 : i32, i32
  }
  func.func @transform_4(%arg0: i32) -> (i32, i32) {
    %c0_i32 = arith.constant 0 : i32
    %c0_i32_0 = arith.constant 0 : i32
    %c0_i32_1 = arith.constant 0 : i32
    return %c0_i32, %c0_i32_0 : i32, i32
  }
  func.func @transform_5(%arg0: i32) -> (i32, i32) {
    %c0_i32 = arith.constant 0 : i32
    %c0_i32_0 = arith.constant 0 : i32
    return %arg0, %c0_i32 : i32, i32
  }
}

</mosaic_0001>

<bundles_post_ra>
// kernel: tpu_custom_call.1
= control target key start
LH: loop header
LB: loop body
LE: loop exit
PB: predicated region body
PF: predicated region fallthrough
CT: control target
= control target key end

     0   :  { %10 = vsyncpa [#allocation3], 0  ;;  %s555_s0 = inlined_call_operand.hbm [shape: f32[8,32], index: 0, kind: input, shape index: {}]   ;;  %s556_s1 = inlined_call_operand.hbm [shape: f32[8,32], index: 1, kind: input, shape index: {}]   ;;  %s557_s2 = inlined_call_operand.hbm [shape: f32[32,32], index: 2, kind: input, shape index: {}]   ;;  %s558_s3 = inlined_call_operand.hbm [shape: f32[32,32], index: 3, kind: input, shape index: {}]   ;;  %s559_s4 = inlined_call_operand.vmem [shape: f32[1,32], index: 4, kind: input, shape index: {}]   ;;  %s560_s5 = inlined_call_operand.hbm [shape: f32[8,32], index: 5, kind: output, shape index: {}]  }
   0x1   :  { %11 = vsyncpa [#allocation6], 0 }
   0x2   :  { %12 = vsyncpa [#allocation9], 0 }
   0x3   :  { %13 = vsyncpa [#allocation4], 0  ;;  %s447_s18 = smov [#allocation5]   ;;  %s448_s20 = smov [#allocation2]  }
   0x4   :  { %s30_s19 = sshll.u32 %s447_s18, 4  ;;  %s20_s21 = sshll.u32 %s448_s20, 4  ;;  %s31_s19 = int_to_ptr.vmem [resolvable:$true] %s30_s19  ;;  %s21_s21 = int_to_ptr.vmem [resolvable:$true] %s20_s21 }
   0x5   :  { %s329_s24 = scalar_lea.hbm %s556_s1, 128 }
   0x6   :  { %p330_p0 = scmp.ne.s32.totalorder %s556_s1, %s329_s24  ;;  %p333_p1 = scmp.lt.u32.totalorder %s329_s24, %s556_s1 }
   0x8   :  { %p335_p2 = pnand %p333_p1, %p330_p0 }
   0xa   :  { %338 = shalt.err (!%p335_p2)
}
   0xb   :  { %s339_s29 = scalar_lea.vmem %s31_s19, 128  ;;  %p344_p4 = scmp.lt.s32.totalorder %s31_s19, %s31_s19 }
   0xc   :  { %p340_p3 = scmp.ne.s32.totalorder %s31_s19, %s339_s29  ;;  %p345_p5 = scmp.lt.s32.totalorder %s339_s29, %s339_s29 }
   0xe   :  { %p346_p6 = por %p345_p5, %p344_p4 }
  0x10   :  { %p347_p7 = pnand %p346_p6, %p340_p3 }
  0x12   :  { %350 = shalt.err (!%p347_p7)
}
  0x13   :  { %33 = dma.hbm_to_vmem [thread:$0]  %s556_s1, 128, %s31_s19, [#allocation6]  }
  0x14   :  { %s351_s9 = scalar_lea.hbm %s555_s0, 128 }
  0x15   :  { %p352_p8 = scmp.ne.s32.totalorder %s555_s0, %s351_s9  ;;  %p355_p9 = scmp.lt.u32.totalorder %s351_s9, %s555_s0 }
  0x17   :  { %p357_p10 = pnand %p355_p9, %p352_p8 }
  0x19   :  { %360 = shalt.err (!%p357_p10)
}
  0x1a   :  { %s361_s14 = scalar_lea.vmem %s21_s21, 128  ;;  %p366_p12 = scmp.lt.s32.totalorder %s21_s21, %s21_s21 }
  0x1b   :  { %p362_p11 = scmp.ne.s32.totalorder %s21_s21, %s361_s14  ;;  %p367_p13 = scmp.lt.s32.totalorder %s361_s14, %s361_s14 }
  0x1d   :  { %p368_p0 = por %p367_p13, %p366_p12 }
  0x1f   :  { %p369_p1 = pnand %p368_p0, %p362_p11 }
  0x21   :  { %372 = shalt.err (!%p369_p1)
}
  0x22   :  { %23 = dma.hbm_to_vmem [thread:$0]  %s555_s0, 128, %s21_s21, [#allocation3]  }
  0x23   :  { %s449_s16 = smov [#allocation7]   ;;  %s373_s20 = scalar_lea.hbm %s557_s2, 512 }
  0x24   :  { %s39_s17 = sshll.u32 %s449_s16, 4  ;;  %p374_p2 = scmp.ne.s32.totalorder %s557_s2, %s373_s20  ;;  %s40_s17 = int_to_ptr.vmem [resolvable:$true] %s39_s17 }
  0x25   :  { %p377_p3 = scmp.lt.u32.totalorder %s373_s20, %s557_s2 }
  0x27   :  { %p379_p4 = pnand %p377_p3, %p374_p2 }
  0x29   :  { %382 = shalt.err (!%p379_p4)
}
  0x2a   :  { %s383_s26 = scalar_lea.vmem %s40_s17, 512  ;;  %p388_p6 = scmp.lt.s32.totalorder %s40_s17, %s40_s17 }
  0x2b   :  { %p384_p5 = scmp.ne.s32.totalorder %s40_s17, %s383_s26  ;;  %p389_p7 = scmp.lt.s32.totalorder %s383_s26, %s383_s26 }
  0x2d   :  { %p390_p8 = por %p389_p7, %p388_p6 }
  0x2f   :  { %p391_p9 = pnand %p390_p8, %p384_p5 }
  0x31   :  { %394 = shalt.err (!%p391_p9)
}
  0x32   :  { %s450_s0 = smov 128   ;;  %s451_s21 = smov 8  }
  0x33   :  { %45 = dma.hbm_to_vmem [thread:$0]  %s557_s2, 512, %s40_s17, [#allocation6], %s450_s0, %s450_s0, %s451_s21  }
  0x34   :  { %s452_s29 = smov [#allocation8]   ;;  %s395_s8 = scalar_lea.hbm %s558_s3, 512 }
  0x35   :  { %s51_s30 = sshll.u32 %s452_s29, 4  ;;  %p396_p10 = scmp.ne.s32.totalorder %s558_s3, %s395_s8  ;;  %s52_s30 = int_to_ptr.vmem [resolvable:$true] %s51_s30 }
  0x36   :  { %p399_p11 = scmp.lt.u32.totalorder %s395_s8, %s558_s3 }
  0x38   :  { %p401_p12 = pnand %p399_p11, %p396_p10 }
  0x3a   :  { %404 = shalt.err (!%p401_p12)
}
  0x3b   :  { %s405_s13 = scalar_lea.vmem %s52_s30, 512  ;;  %p410_p0 = scmp.lt.s32.totalorder %s52_s30, %s52_s30 }
  0x3c   :  { %p406_p13 = scmp.ne.s32.totalorder %s52_s30, %s405_s13  ;;  %p411_p1 = scmp.lt.s32.totalorder %s405_s13, %s405_s13 }
  0x3e   :  { %p412_p2 = por %p411_p1, %p410_p0 }
  0x40   :  { %p413_p3 = pnand %p412_p2, %p406_p13 }
  0x42   :  { %416 = shalt.err (!%p413_p3)
}
  0x43   :  { %57 = dma.hbm_to_vmem [thread:$0]  %s558_s3, 512, %s52_s30, [#allocation9], %s450_s0, %s450_s0, %s451_s21  }
  0x44   :  { %439 = dma.done.wait [#allocation3], 128  }
  0x45   :  { %440 = vsyncadd [#allocation3], 4294967168 }
  0x46   :  { %441 = dma.done.wait [#allocation6], 640  }
  0x47   :  { %442 = vsyncadd [#allocation6], 4294966656 }
  0x48   :  { %443 = dma.done.wait [#allocation9], 512  }
  0x49   :  { %444 = vsyncadd [#allocation9], 4294966784  ;;  %v453_v0 = vmov 0.0|0.0   ;;  %vm454_vm0 = vmmov 0   ;;  %v455_v1 = vmov 0.0   ;;  %v78_v2 = vld [vmem:[#allocation8] sm:$0xff] }
  0x4a   :  { %303 = vmatprep.subr.bf16.mxu0 %v453_v0  ;;  %309 = vmatprep.subr.bf16.mxu1 %v453_v0  ;;  %v79_v3 = vld [vmem:[#allocation8 + $0x8] sm:$0xff]  ;;  %v73_v4 = vld [vmem:[#allocation7] sm:$0xff]  ;;  %v80_v7 = vld [vmem:[#allocation8 + $0x10] sm:$0xff]  ;;  %vm82_vm1 = vcmask 261120   ;;  %s456_s15 = smov [#allocation10]  }
  0x4b   :  { %289 = vmatprep.mubr.msk.f32.mxu0 %vm454_vm0, %v455_v1  ;;  %300 = vmatprep.mubr.msk.f32.mxu1 %vm454_vm0, %v455_v1  ;;  %v304_v5 = vpack.c.bf16 %v79_v3, %v78_v2  ;;  %v74_v6 = vld [vmem:[#allocation7 + $0x8] sm:$0xff]  ;;  %v81_v8 = vld [vmem:[#allocation8 + $0x18] sm:$0xff]  ;;  %v75_v10 = vld [vmem:[#allocation7 + $0x10] sm:$0xff] }
  0x4c   :  { %v310_v9 = vpack.c.bf16 %v74_v6, %v73_v4  ;;  %v76_v11 = vld [vmem:[#allocation7 + $0x18] sm:$0xff]  ;;  %v307_v12 = vpack.c.bf16 %v81_v8, %v80_v7  ;;  %v72_v15 = vld [vmem:[#allocation2] sm:$0xff] }
  0x4d   :  { %305 = vmatpush3.bf16.msra.mxu0 %v304_v5  ;;  %v313_v13 = vpack.c.bf16 %v76_v11, %v75_v10  ;;  %v77_v14 = vld [vmem:[#allocation5] sm:$0xff]  ;;  %v270_v19 = vld [vmem:[%s559_s4] ss:$0 sm:$0xff]  ;;  %s257_s4 = sshll.u32 %s456_s15, 4  ;;  %s258_s4 = int_to_ptr.vmem [resolvable:$true] %s257_s4 }
  0x4e   :  { %311 = vmatpush3.bf16.msra.mxu1 %v310_v9  ;;  %306 = vmatprep.subr.bf16.mxu0 %v453_v0  ;;  %s417_s16 = scalar_lea.vmem %s258_s4, 128  ;;  %p422_p5 = scmp.lt.s32.totalorder %s258_s4, %s258_s4 }
  0x4f   :  { %312 = vmatprep.subr.bf16.mxu1 %v453_v0  ;;  %p418_p4 = scmp.ne.s32.totalorder %s258_s4, %s417_s16  ;;  %p423_p6 = scmp.lt.s32.totalorder %s417_s16, %s417_s16 }
  0x51   :  { %308 = vmatpush3.bf16.msra.mxu0 %v307_v12  ;;  %p424_p7 = por %p423_p6, %p422_p5 }
  0x52   :  { %314 = vmatpush3.bf16.msra.mxu1 %v313_v13 }
  0x53   :  { %p425_p8 = pnand %p424_p7, %p418_p4 }
  0x54   :  { %290 = vmatmul.mubr.msk.f32.vlgmr.msra.gmra.mrb[0].mxu0 %vm82_vm1, %v77_v14 }
  0x55   :  { %301 = vmatmul.mubr.msk.f32.vlgmr.msra.gmra.mrb[0].mxu1 %vm82_vm1, %v72_v15 }
 0x127   :  { %v152_v16 = vpop.f32.mrb[0].mxu0 }
 0x128   :  { %v225_v17 = vpop.f32.mrb[0].mxu1  ;;  %v291_v18 = vpop.f32.mrb[1].mxu0 }
 0x129   :  { %v226_v20 = vadd.f32 %v225_v17, %v152_v16  ;;  %v302_v21 = vpop.f32.mrb[1].mxu1 }
 0x12b   :  { %v236_v22 = vadd.f32 %v270_v19, %v226_v20 }
 0x12d   :  { %v237_v23 = vmax.f32 %v236_v22, 0.0 }
 0x12f   :  { %v238_v24 = vsel %vm82_vm1, %v237_v23, -inf }
 0x130   :  { %239 = vmax.xlane.f32.xlu0 %v238_v24 }
 0x1bd   :  { %v240_v25 = vpop.xlane.xlu0 %239 }
 0x1be   :  { %v241_v26 = vsub.f32 %v237_v23, %v240_v25 }
 0x1c0   :  { %v242_v27 = vmul.f32 1.442695, %v241_v26 }
 0x1c2   :  { %325 = vpow2.f32 %v242_v27 }
 0x1cc   :  { %v326_v28 = vpop.eup %325 }
 0x1cd   :  { %v244_v29 = vsel %vm82_vm1, %v326_v28, 0.0 }
 0x1ce   :  { %245 = vadd.xlane.f32.xlu0 %v244_v29 }
 0x25b   :  { %v246_v30 = vpop.xlane.xlu0 %245 }
 0x25c   :  { %327 = vrcp.f32 %v246_v30 }
 0x266   :  { %v328_v31 = vpop.eup %327 }
 0x267   :  { %v248_v32 = vmul.f32 %v328_v31, %v326_v28 }
 0x269   :  { %v249_v33 = vmul.f32 %v248_v32, %v72_v15 }
 0x26b   :  { %250 = vst.msk [vmem:[#allocation10] sm:$0xff] %vm82_vm1, %v249_v33 }
 0x26c   :  { %428 = shalt.err (!%p425_p8)
}
 0x26d   :  { %s429_s19 = scalar_lea.hbm %s560_s5, 128 }
 0x26e   :  { %p430_p9 = scmp.ne.s32.totalorder %s560_s5, %s429_s19  ;;  %p433_p10 = scmp.lt.u32.totalorder %s429_s19, %s560_s5 }
 0x270   :  { %p435_p11 = pnand %p433_p10, %p430_p9 }
 0x272   :  { %438 = shalt.err (!%p435_p11)
}
 0x273   :  { %260 = dma.vmem_to_hbm [thread:$0]  %s258_s4, 128, %s560_s5, [#allocation4]  }
 0x274   :  { %445 = dma.done.wait [#allocation4], 128  }
 0x275   :  { %446 = vsyncadd [#allocation4], 4294967168 }
 0x276   :  { %264 = vsyncpa [#allocation3], 1 }
 0x277   :  { %265 = vsyncpa [#allocation6], 1 }
 0x278   :  { %266 = vsyncpa [#allocation9], 1 }
 0x279   :  { %267 = vsyncpa [#allocation4], 1 }

</bundles_post_ra>
